<compile_context>
chip_gen: v7x
topology: tpu7x:2x2x1
jax: 0.10.0
libtpu: 0.0.40
codegen_flags: <defaults>
</compile_context>

<pallas_src>
import jax
import jax.numpy as jnp
from jax import lax
from jax.experimental import pallas as pl
from jax.experimental.pallas import tpu as pltpu

INPUT_SIZE = 1
HIDDEN = 32
TIME_STEP = 10


def lstm_kernel(x_ref, wih_ref, whh_ref, b_ref, wout_ref, bout_ref,
                h0_ref, c0_ref, outs_ref, hn_ref, cn_ref):
    """Full LSTM rollout + fused Linear(32,1) head.

    x_ref    : (T, B, 1)    time-major input (B padded to a multiple of 8)
    wih_ref  : (1, 4H)      W_ih^T  (input_size == 1)
    whh_ref  : (H, 4H)      W_hh^T
    b_ref    : (1, 4H)      b_ih + b_hh
    wout_ref : (H, 1)       output head weight^T
    bout_ref : (1, 1)       output head bias
    h0_ref/c0_ref : (B, H)  initial state
    outs_ref : (T*B, 1)     head output, time-major rows (reshaped in wrapper)
    hn_ref/cn_ref : (B, H)  final state
    """
    H = HIDDEN
    T = x_ref.shape[0]

    # Hoisted input + bias contribution for every timestep in one vectorized
    # op: (T, B, 1) * (1, 4H) + (1, 4H) -> (T, B, 4H).
    gx = x_ref[...] * wih_ref[...] + b_ref[...]

    whh = whh_ref[...]                       # (H, 4H), loaded once
    h = h0_ref[...]                          # (B, H)
    c = c0_ref[...]                          # (B, H)

    hs = []
    # T = 10 is static -> fully unrolled recurrence (scheduler sees across
    # iterations; gx[t] indexing is compile-time static).
    for t in range(T):
        # Recurrent projection: (B, H) x (H, 4H) on the MXU.
        # TODO(synk): on v5e a VPU broadcast-MAC alternative for this tiny
        # matmul may beat the MXU push/pop latency; needs an A/B on hardware.
        gates = gx[t] + jnp.dot(h, whh, preferred_element_type=jnp.float32)

        # One EUP sigmoid over the full 4H = 128-lane vreg, then lane-slice.
        act = jax.nn.sigmoid(gates)
        i = act[:, 0:H]
        f = act[:, H:2 * H]
        o = act[:, 3 * H:4 * H]
        g = jnp.tanh(gates[:, 2 * H:3 * H])

        c = f * c + i * g
        h = o * jnp.tanh(c)
        hs.append(h)

    hn_ref[...] = h
    cn_ref[...] = c

    # Hoisted output head: one (T*B, H) x (H, 1) matmul + bias, single store.
    h_all = jnp.concatenate(hs, axis=0)                       # (T*B, H)
    outs_ref[...] = (jnp.dot(h_all, wout_ref[...],
                             preferred_element_type=jnp.float32)
                     + bout_ref[...])                         # (T*B, 1)


def init_params(key):
    """Deterministic init with PyTorch shapes (uniform(-1/sqrt(H), 1/sqrt(H)))."""
    ks = jax.random.split(key, 6)
    k = 1.0 / jnp.sqrt(jnp.float32(HIDDEN))
    u = lambda kk, shape: jax.random.uniform(kk, shape, jnp.float32, -k, k)
    return {
        "w_ih": u(ks[0], (4 * HIDDEN, INPUT_SIZE)),   # LSTM weight_ih_l0
        "w_hh": u(ks[1], (4 * HIDDEN, HIDDEN)),       # LSTM weight_hh_l0
        "b_ih": u(ks[2], (4 * HIDDEN,)),
        "b_hh": u(ks[3], (4 * HIDDEN,)),
        "w_out": u(ks[4], (1, HIDDEN)),               # nn.Linear(32, 1).weight
        "b_out": u(ks[5], (1,)),
    }


def _pad_batch(a, bp):
    b = a.shape[0]
    if b == bp:
        return a
    return jnp.pad(a, [(0, bp - b)] + [(0, 0)] * (a.ndim - 1))


def my_rnn_forward(params, x, h_n=None, h_c=None):
    B, T, I = x.shape
    assert T == TIME_STEP and I == INPUT_SIZE
    Bp = ((B + 7) // 8) * 8                     # pad batch to full 8-sublane tiles

    if h_n is None and h_c is None:
        h0 = jnp.zeros((B, HIDDEN), jnp.float32)
        c0 = jnp.zeros((B, HIDDEN), jnp.float32)
    else:
        h0 = h_n.reshape(B, HIDDEN).astype(jnp.float32)
        c0 = h_c.reshape(B, HIDDEN).astype(jnp.float32)

    x_p = _pad_batch(x.astype(jnp.float32), Bp)                # (Bp, T, I)
    h0_p = _pad_batch(h0, Bp)                                  # (Bp, H)
    c0_p = _pad_batch(c0, Bp)                                  # (Bp, H)
    x_tm = jnp.transpose(x_p, (1, 0, 2))                       # (T, Bp, I)

    wih_T = params["w_ih"].T.astype(jnp.float32)               # (1, 4H)
    whh_T = params["w_hh"].T.astype(jnp.float32)               # (H, 4H)
    b = (params["b_ih"] + params["b_hh"]).reshape(1, 4 * HIDDEN).astype(jnp.float32)
    wout = params["w_out"].T.astype(jnp.float32)               # (H, 1)
    bout = params["b_out"].reshape(1, 1).astype(jnp.float32)   # (1, 1)

    outs_flat, h_n_p, c_n_p = pl.pallas_call(
        lstm_kernel,
        out_shape=(
            jax.ShapeDtypeStruct((T * Bp, 1), jnp.float32),
            jax.ShapeDtypeStruct((Bp, HIDDEN), jnp.float32),
            jax.ShapeDtypeStruct((Bp, HIDDEN), jnp.float32),
        ),
        in_specs=[pl.BlockSpec(memory_space=pltpu.MemorySpace.VMEM)] * 8,
        out_specs=(pl.BlockSpec(memory_space=pltpu.MemorySpace.VMEM),) * 3,
    )(x_tm, wih_T, whh_T, b, wout, bout, h0_p, c0_p)

    outs_tm = outs_flat.reshape(T, Bp, 1)[:, :B, :]            # (T, B, 1)
    outs = jnp.transpose(outs_tm, (1, 0, 2))                   # (B, T, 1)
    return outs, h_n_p[None, :B, :], c_n_p[None, :B, :]        # h_n/h_c: (1, B, H)


def _reference_forward(params, x, h0, c0):
    """Pure-JAX reference (mirrors torch.nn.LSTM + Linear) for a sanity check."""
    H = HIDDEN
    wih, whh = params["w_ih"], params["w_hh"]
    b = params["b_ih"] + params["b_hh"]

    def cell(carry, x_t):
        h, c = carry
        g = x_t @ wih.T + h @ whh.T + b
        i, f, gg, o = (jax.nn.sigmoid(g[:, :H]), jax.nn.sigmoid(g[:, H:2 * H]),
                       jnp.tanh(g[:, 2 * H:3 * H]), jax.nn.sigmoid(g[:, 3 * H:]))
        c = f * c + i * gg
        h = o * jnp.tanh(c)
        return (h, c), h

    (hT, cT), hs = lax.scan(cell, (h0, c0), jnp.transpose(x, (1, 0, 2)))
    r_out = jnp.transpose(hs, (1, 0, 2))                       # (B, T, H)
    outs = r_out.reshape(-1, H) @ params["w_out"].T + params["b_out"]
    return outs.reshape(-1, TIME_STEP, 1), hT[None], cT[None]


if __name__ == "__main__":
    key = jax.random.PRNGKey(0)
    pkey, xkey = jax.random.split(key)
    params = init_params(pkey)

    B = 4
    x = jax.random.normal(xkey, (B, TIME_STEP, INPUT_SIZE), jnp.float32)

    # stateless call (h = None), as in the first training step of the original
    outs, h_n, h_c = my_rnn_forward(params, x, None, None)
    jax.block_until_ready((outs, h_n, h_c))

    r_outs, r_hn, r_hc = _reference_forward(
        params, x, jnp.zeros((B, HIDDEN)), jnp.zeros((B, HIDDEN)))
    assert outs.shape == (B, TIME_STEP, 1)
    assert h_n.shape == (1, B, HIDDEN) and h_c.shape == (1, B, HIDDEN)
    assert jnp.allclose(outs, r_outs, atol=1e-4)
    assert jnp.allclose(h_n, r_hn, atol=1e-4)
    assert jnp.allclose(h_c, r_hc, atol=1e-4)

    # stateful call (carry h_n / h_c forward), as in subsequent training steps
    outs2, h_n2, h_c2 = my_rnn_forward(params, x, h_n, h_c)
    jax.block_until_ready((outs2, h_n2, h_c2))
    r_outs2, r_hn2, r_hc2 = _reference_forward(params, x, r_hn[0], r_hc[0])
    assert jnp.allclose(outs2, r_outs2, atol=2e-4)
    assert jnp.allclose(h_n2, r_hn2, atol=2e-4)
    assert jnp.allclose(h_c2, r_hc2, atol=2e-4)

    print("KERNEL_OK")
</pallas_src>

<mosaic_0001>
module attributes {stable_mosaic.version = 11 : i64} {
  func.func @lstm_kernel(%arg0: memref<10x8x1xf32, #tpu.memory_space<vmem>>, %arg1: memref<1x128xf32, #tpu.memory_space<vmem>>, %arg2: memref<32x128xf32, #tpu.memory_space<vmem>>, %arg3: memref<1x128xf32, #tpu.memory_space<vmem>>, %arg4: memref<32x1xf32, #tpu.memory_space<vmem>>, %arg5: memref<1x1xf32, #tpu.memory_space<vmem>>, %arg6: memref<8x32xf32, #tpu.memory_space<vmem>>, %arg7: memref<8x32xf32, #tpu.memory_space<vmem>>, %arg8: memref<80x1xf32, #tpu.memory_space<vmem>>, %arg9: memref<8x32xf32, #tpu.memory_space<vmem>>, %arg10: memref<8x32xf32, #tpu.memory_space<vmem>>) attributes {dimension_semantics = [], scalar_prefetch = 0 : i64, scratch_operands = 0 : i64, tpu.core_type = #tpu.core_type<tc>} {
    %c0 = arith.constant 0 : index
    %c0_0 = arith.constant 0 : index
    %c0_1 = arith.constant 0 : index
    %0 = vector.load %arg0[%c0, %c0_0, %c0_1] : memref<10x8x1xf32, #tpu.memory_space<vmem>>, vector<10x8x1xf32>
    %c0_2 = arith.constant 0 : index
    %c0_3 = arith.constant 0 : index
    %1 = vector.load %arg1[%c0_2, %c0_3] : memref<1x128xf32, #tpu.memory_space<vmem>>, vector<1x128xf32>
    %2 = vector.shape_cast %1 : vector<1x128xf32> to vector<1x1x128xf32>
    %3 = vector.broadcast %0 : vector<10x8x1xf32> to vector<10x8x128xf32>
    %4 = vector.broadcast %2 : vector<1x1x128xf32> to vector<10x8x128xf32>
    %5 = arith.mulf %3, %4 : vector<10x8x128xf32>
    %c0_4 = arith.constant 0 : index
    %c0_5 = arith.constant 0 : index
    %6 = vector.load %arg3[%c0_4, %c0_5] : memref<1x128xf32, #tpu.memory_space<vmem>>, vector<1x128xf32>
    %7 = vector.shape_cast %6 : vector<1x128xf32> to vector<1x1x128xf32>
    %8 = vector.broadcast %7 : vector<1x1x128xf32> to vector<10x8x128xf32>
    %9 = arith.addf %5, %8 : vector<10x8x128xf32>
    %c0_6 = arith.constant 0 : index
    %c0_7 = arith.constant 0 : index
    %10 = vector.load %arg2[%c0_6, %c0_7] : memref<32x128xf32, #tpu.memory_space<vmem>>, vector<32x128xf32>
    %c0_8 = arith.constant 0 : index
    %c0_9 = arith.constant 0 : index
    %11 = vector.load %arg6[%c0_8, %c0_9] : memref<8x32xf32, #tpu.memory_space<vmem>>, vector<8x32xf32>
    %c0_10 = arith.constant 0 : index
    %c0_11 = arith.constant 0 : index
    %12 = vector.load %arg7[%c0_10, %c0_11] : memref<8x32xf32, #tpu.memory_space<vmem>>, vector<8x32xf32>
    %13 = vector.extract_strided_slice %9 {offsets = [0, 0, 0], sizes = [1, 8, 128], strides = [1, 1, 1]} : vector<10x8x128xf32> to vector<1x8x128xf32>
    %14 = vector.shape_cast %13 : vector<1x8x128xf32> to vector<8x128xf32>
    %cst = arith.constant dense<0.000000e+00> : vector<8x128xf32>
    %15 = tpu.matmul %11, %10, %cst {dimension_numbers = #tpu.dot_dimension_numbers<[1], [0], [0], [1], [0, 0, 1, 1], [], []>} : vector<8x32xf32>, vector<32x128xf32>, vector<8x128xf32> -> vector<8x128xf32>
    %16 = arith.addf %14, %15 : vector<8x128xf32>
    %17 = arith.negf %16 : vector<8x128xf32>
    %18 = math.exp %17 : vector<8x128xf32>
    %cst_12 = arith.constant 1.000000e+00 : f32
    %19 = vector.broadcast %cst_12 : f32 to vector<8x128xf32>
    %20 = arith.addf %19, %18 : vector<8x128xf32>
    %21 = arith.divf %19, %20 : vector<8x128xf32>
    %22 = vector.extract_strided_slice %21 {offsets = [0, 0], sizes = [8, 32], strides = [1, 1]} : vector<8x128xf32> to vector<8x32xf32>
    %23 = vector.extract_strided_slice %21 {offsets = [0, 32], sizes = [8, 32], strides = [1, 1]} : vector<8x128xf32> to vector<8x32xf32>
    %24 = vector.extract_strided_slice %21 {offsets = [0, 96], sizes = [8, 32], strides = [1, 1]} : vector<8x128xf32> to vector<8x32xf32>
    %25 = vector.extract_strided_slice %16 {offsets = [0, 64], sizes = [8, 32], strides = [1, 1]} : vector<8x128xf32> to vector<8x32xf32>
    %26 = math.tanh %25 : vector<8x32xf32>
    %27 = arith.mulf %23, %12 : vector<8x32xf32>
    %28 = arith.mulf %22, %26 : vector<8x32xf32>
    %29 = arith.addf %27, %28 : vector<8x32xf32>
    %30 = math.tanh %29 : vector<8x32xf32>
    %31 = arith.mulf %24, %30 : vector<8x32xf32>
    %32 = vector.extract_strided_slice %9 {offsets = [1, 0, 0], sizes = [1, 8, 128], strides = [1, 1, 1]} : vector<10x8x128xf32> to vector<1x8x128xf32>
    %33 = vector.shape_cast %32 : vector<1x8x128xf32> to vector<8x128xf32>
    %cst_13 = arith.constant dense<0.000000e+00> : vector<8x128xf32>
    %34 = tpu.matmul %31, %10, %cst_13 {dimension_numbers = #tpu.dot_dimension_numbers<[1], [0], [0], [1], [0, 0, 1, 1], [], []>} : vector<8x32xf32>, vector<32x128xf32>, vector<8x128xf32> -> vector<8x128xf32>
    %35 = arith.addf %33, %34 : vector<8x128xf32>
    %36 = arith.negf %35 : vector<8x128xf32>
    %37 = math.exp %36 : vector<8x128xf32>
    %cst_14 = arith.constant 1.000000e+00 : f32
    %38 = vector.broadcast %cst_14 : f32 to vector<8x128xf32>
    %39 = arith.addf %38, %37 : vector<8x128xf32>
    %40 = arith.divf %38, %39 : vector<8x128xf32>
    %41 = vector.extract_strided_slice %40 {offsets = [0, 0], sizes = [8, 32], strides = [1, 1]} : vector<8x128xf32> to vector<8x32xf32>
    %42 = vector.extract_strided_slice %40 {offsets = [0, 32], sizes = [8, 32], strides = [1, 1]} : vector<8x128xf32> to vector<8x32xf32>
    %43 = vector.extract_strided_slice %40 {offsets = [0, 96], sizes = [8, 32], strides = [1, 1]} : vector<8x128xf32> to vector<8x32xf32>
    %44 = vector.extract_strided_slice %35 {offsets = [0, 64], sizes = [8, 32], strides = [1, 1]} : vector<8x128xf32> to vector<8x32xf32>
    %45 = math.tanh %44 : vector<8x32xf32>
    %46 = arith.mulf %42, %29 : vector<8x32xf32>
    %47 = arith.mulf %41, %45 : vector<8x32xf32>
    %48 = arith.addf %46, %47 : vector<8x32xf32>
    %49 = math.tanh %48 : vector<8x32xf32>
    %50 = arith.mulf %43, %49 : vector<8x32xf32>
    %51 = vector.extract_strided_slice %9 {offsets = [2, 0, 0], sizes = [1, 8, 128], strides = [1, 1, 1]} : vector<10x8x128xf32> to vector<1x8x128xf32>
    %52 = vector.shape_cast %51 : vector<1x8x128xf32> to vector<8x128xf32>
    %cst_15 = arith.constant dense<0.000000e+00> : vector<8x128xf32>
    %53 = tpu.matmul %50, %10, %cst_15 {dimension_numbers = #tpu.dot_dimension_numbers<[1], [0], [0], [1], [0, 0, 1, 1], [], []>} : vector<8x32xf32>, vector<32x128xf32>, vector<8x128xf32> -> vector<8x128xf32>
    %54 = arith.addf %52, %53 : vector<8x128xf32>
    %55 = arith.negf %54 : vector<8x128xf32>
    %56 = math.exp %55 : vector<8x128xf32>
    %cst_16 = arith.constant 1.000000e+00 : f32
    %57 = vector.broadcast %cst_16 : f32 to vector<8x128xf32>
    %58 = arith.addf %57, %56 : vector<8x128xf32>
    %59 = arith.divf %57, %58 : vector<8x128xf32>
    %60 = vector.extract_strided_slice %59 {offsets = [0, 0], sizes = [8, 32], strides = [1, 1]} : vector<8x128xf32> to vector<8x32xf32>
    %61 = vector.extract_strided_slice %59 {offsets = [0, 32], sizes = [8, 32], strides = [1, 1]} : vector<8x128xf32> to vector<8x32xf32>
    %62 = vector.extract_strided_slice %59 {offsets = [0, 96], sizes = [8, 32], strides = [1, 1]} : vector<8x128xf32> to vector<8x32xf32>
    %63 = vector.extract_strided_slice %54 {offsets = [0, 64], sizes = [8, 32], strides = [1, 1]} : vector<8x128xf32> to vector<8x32xf32>
    %64 = math.tanh %63 : vector<8x32xf32>
    %65 = arith.mulf %61, %48 : vector<8x32xf32>
    %66 = arith.mulf %60, %64 : vector<8x32xf32>
    %67 = arith.addf %65, %66 : vector<8x32xf32>
    %68 = math.tanh %67 : vector<8x32xf32>
    %69 = arith.mulf %62, %68 : vector<8x32xf32>
    %70 = vector.extract_strided_slice %9 {offsets = [3, 0, 0], sizes = [1, 8, 128], strides = [1, 1, 1]} : vector<10x8x128xf32> to vector<1x8x128xf32>
    %71 = vector.shape_cast %70 : vector<1x8x128xf32> to vector<8x128xf32>
    %cst_17 = arith.constant dense<0.000000e+00> : vector<8x128xf32>
    %72 = tpu.matmul %69, %10, %cst_17 {dimension_numbers = #tpu.dot_dimension_numbers<[1], [0], [0], [1], [0, 0, 1, 1], [], []>} : vector<8x32xf32>, vector<32x128xf32>, vector<8x128xf32> -> vector<8x128xf32>
    %73 = arith.addf %71, %72 : vector<8x128xf32>
    %74 = arith.negf %73 : vector<8x128xf32>
    %75 = math.exp %74 : vector<8x128xf32>
    %cst_18 = arith.constant 1.000000e+00 : f32
    %76 = vector.broadcast %cst_18 : f32 to vector<8x128xf32>
    %77 = arith.addf %76, %75 : vector<8x128xf32>
    %78 = arith.divf %76, %77 : vector<8x128xf32>
    %79 = vector.extract_strided_slice %78 {offsets = [0, 0], sizes = [8, 32], strides = [1, 1]} : vector<8x128xf32> to vector<8x32xf32>
    %80 = vector.extract_strided_slice %78 {offsets = [0, 32], sizes = [8, 32], strides = [1, 1]} : vector<8x128xf32> to vector<8x32xf32>
    %81 = vector.extract_strided_slice %78 {offsets = [0, 96], sizes = [8, 32], strides = [1, 1]} : vector<8x128xf32> to vector<8x32xf32>
    %82 = vector.extract_strided_slice %73 {offsets = [0, 64], sizes = [8, 32], strides = [1, 1]} : vector<8x128xf32> to vector<8x32xf32>
    %83 = math.tanh %82 : vector<8x32xf32>
    %84 = arith.mulf %80, %67 : vector<8x32xf32>
    %85 = arith.mulf %79, %83 : vector<8x32xf32>
    %86 = arith.addf %84, %85 : vector<8x32xf32>
    %87 = math.tanh %86 : vector<8x32xf32>
    %88 = arith.mulf %81, %87 : vector<8x32xf32>
    %89 = vector.extract_strided_slice %9 {offsets = [4, 0, 0], sizes = [1, 8, 128], strides = [1, 1, 1]} : vector<10x8x128xf32> to vector<1x8x128xf32>
    %90 = vector.shape_cast %89 : vector<1x8x128xf32> to vector<8x128xf32>
    %cst_19 = arith.constant dense<0.000000e+00> : vector<8x128xf32>
    %91 = tpu.matmul %88, %10, %cst_19 {dimension_numbers = #tpu.dot_dimension_numbers<[1], [0], [0], [1], [0, 0, 1, 1], [], []>} : vector<8x32xf32>, vector<32x128xf32>, vector<8x128xf32> -> vector<8x128xf32>
    %92 = arith.addf %90, %91 : vector<8x128xf32>
    %93 = arith.negf %92 : vector<8x128xf32>
    %94 = math.exp %93 : vector<8x128xf32>
    %cst_20 = arith.constant 1.000000e+00 : f32
    %95 = vector.broadcast %cst_20 : f32 to vector<8x128xf32>
    %96 = arith.addf %95, %94 : vector<8x128xf32>
    %97 = arith.divf %95, %96 : vector<8x128xf32>
    %98 = vector.extract_strided_slice %97 {offsets = [0, 0], sizes = [8, 32], strides = [1, 1]} : vector<8x128xf32> to vector<8x32xf32>
    %99 = vector.extract_strided_slice %97 {offsets = [0, 32], sizes = [8, 32], strides = [1, 1]} : vector<8x128xf32> to vector<8x32xf32>
    %100 = vector.extract_strided_slice %97 {offsets = [0, 96], sizes = [8, 32], strides = [1, 1]} : vector<8x128xf32> to vector<8x32xf32>
    %101 = vector.extract_strided_slice %92 {offsets = [0, 64], sizes = [8, 32], strides = [1, 1]} : vector<8x128xf32> to vector<8x32xf32>
    %102 = math.tanh %101 : vector<8x32xf32>
    %103 = arith.mulf %99, %86 : vector<8x32xf32>
    %104 = arith.mulf %98, %102 : vector<8x32xf32>
    %105 = arith.addf %103, %104 : vector<8x32xf32>
    %106 = math.tanh %105 : vector<8x32xf32>
    %107 = arith.mulf %100, %106 : vector<8x32xf32>
    %108 = vector.extract_strided_slice %9 {offsets = [5, 0, 0], sizes = [1, 8, 128], strides = [1, 1, 1]} : vector<10x8x128xf32> to vector<1x8x128xf32>
    %109 = vector.shape_cast %108 : vector<1x8x128xf32> to vector<8x128xf32>
    %cst_21 = arith.constant dense<0.000000e+00> : vector<8x128xf32>
    %110 = tpu.matmul %107, %10, %cst_21 {dimension_numbers = #tpu.dot_dimension_numbers<[1], [0], [0], [1], [0, 0, 1, 1], [], []>} : vector<8x32xf32>, vector<32x128xf32>, vector<8x128xf32> -> vector<8x128xf32>
    %111 = arith.addf %109, %110 : vector<8x128xf32>
    %112 = arith.negf %111 : vector<8x128xf32>
    %113 = math.exp %112 : vector<8x128xf32>
    %cst_22 = arith.constant 1.000000e+00 : f32
    %114 = vector.broadcast %cst_22 : f32 to vector<8x128xf32>
    %115 = arith.addf %114, %113 : vector<8x128xf32>
    %116 = arith.divf %114, %115 : vector<8x128xf32>
    %117 = vector.extract_strided_slice %116 {offsets = [0, 0], sizes = [8, 32], strides = [1, 1]} : vector<8x128xf32> to vector<8x32xf32>
    %118 = vector.extract_strided_slice %116 {offsets = [0, 32], sizes = [8, 32], strides = [1, 1]} : vector<8x128xf32> to vector<8x32xf32>
    %119 = vector.extract_strided_slice %116 {offsets = [0, 96], sizes = [8, 32], strides = [1, 1]} : vector<8x128xf32> to vector<8x32xf32>
    %120 = vector.extract_strided_slice %111 {offsets = [0, 64], sizes = [8, 32], strides = [1, 1]} : vector<8x128xf32> to vector<8x32xf32>
    %121 = math.tanh %120 : vector<8x32xf32>
    %122 = arith.mulf %118, %105 : vector<8x32xf32>
    %123 = arith.mulf %117, %121 : vector<8x32xf32>
    %124 = arith.addf %122, %123 : vector<8x32xf32>
    %125 = math.tanh %124 : vector<8x32xf32>
    %126 = arith.mulf %119, %125 : vector<8x32xf32>
    %127 = vector.extract_strided_slice %9 {offsets = [6, 0, 0], sizes = [1, 8, 128], strides = [1, 1, 1]} : vector<10x8x128xf32> to vector<1x8x128xf32>
    %128 = vector.shape_cast %127 : vector<1x8x128xf32> to vector<8x128xf32>
    %cst_23 = arith.constant dense<0.000000e+00> : vector<8x128xf32>
    %129 = tpu.matmul %126, %10, %cst_23 {dimension_numbers = #tpu.dot_dimension_numbers<[1], [0], [0], [1], [0, 0, 1, 1], [], []>} : vector<8x32xf32>, vector<32x128xf32>, vector<8x128xf32> -> vector<8x128xf32>
    %130 = arith.addf %128, %129 : vector<8x128xf32>
    %131 = arith.negf %130 : vector<8x128xf32>
    %132 = math.exp %131 : vector<8x128xf32>
    %cst_24 = arith.constant 1.000000e+00 : f32
    %133 = vector.broadcast %cst_24 : f32 to vector<8x128xf32>
    %134 = arith.addf %133, %132 : vector<8x128xf32>
    %135 = arith.divf %133, %134 : vector<8x128xf32>
    %136 = vector.extract_strided_slice %135 {offsets = [0, 0], sizes = [8, 32], strides = [1, 1]} : vector<8x128xf32> to vector<8x32xf32>
    %137 = vector.extract_strided_slice %135 {offsets = [0, 32], sizes = [8, 32], strides = [1, 1]} : vector<8x128xf32> to vector<8x32xf32>
    %138 = vector.extract_strided_slice %135 {offsets = [0, 96], sizes = [8, 32], strides = [1, 1]} : vector<8x128xf32> to vector<8x32xf32>
    %139 = vector.extract_strided_slice %130 {offsets = [0, 64], sizes = [8, 32], strides = [1, 1]} : vector<8x128xf32> to vector<8x32xf32>
    %140 = math.tanh %139 : vector<8x32xf32>
    %141 = arith.mulf %137, %124 : vector<8x32xf32>
    %142 = arith.mulf %136, %140 : vector<8x32xf32>
    %143 = arith.addf %141, %142 : vector<8x32xf32>
    %144 = math.tanh %143 : vector<8x32xf32>
    %145 = arith.mulf %138, %144 : vector<8x32xf32>
    %146 = vector.extract_strided_slice %9 {offsets = [7, 0, 0], sizes = [1, 8, 128], strides = [1, 1, 1]} : vector<10x8x128xf32> to vector<1x8x128xf32>
    %147 = vector.shape_cast %146 : vector<1x8x128xf32> to vector<8x128xf32>
    %cst_25 = arith.constant dense<0.000000e+00> : vector<8x128xf32>
    %148 = tpu.matmul %145, %10, %cst_25 {dimension_numbers = #tpu.dot_dimension_numbers<[1], [0], [0], [1], [0, 0, 1, 1], [], []>} : vector<8x32xf32>, vector<32x128xf32>, vector<8x128xf32> -> vector<8x128xf32>
    %149 = arith.addf %147, %148 : vector<8x128xf32>
    %150 = arith.negf %149 : vector<8x128xf32>
    %151 = math.exp %150 : vector<8x128xf32>
    %cst_26 = arith.constant 1.000000e+00 : f32
    %152 = vector.broadcast %cst_26 : f32 to vector<8x128xf32>
    %153 = arith.addf %152, %151 : vector<8x128xf32>
    %154 = arith.divf %152, %153 : vector<8x128xf32>
    %155 = vector.extract_strided_slice %154 {offsets = [0, 0], sizes = [8, 32], strides = [1, 1]} : vector<8x128xf32> to vector<8x32xf32>
    %156 = vector.extract_strided_slice %154 {offsets = [0, 32], sizes = [8, 32], strides = [1, 1]} : vector<8x128xf32> to vector<8x32xf32>
    %157 = vector.extract_strided_slice %154 {offsets = [0, 96], sizes = [8, 32], strides = [1, 1]} : vector<8x128xf32> to vector<8x32xf32>
    %158 = vector.extract_strided_slice %149 {offsets = [0, 64], sizes = [8, 32], strides = [1, 1]} : vector<8x128xf32> to vector<8x32xf32>
    %159 = math.tanh %158 : vector<8x32xf32>
    %160 = arith.mulf %156, %143 : vector<8x32xf32>
    %161 = arith.mulf %155, %159 : vector<8x32xf32>
    %162 = arith.addf %160, %161 : vector<8x32xf32>
    %163 = math.tanh %162 : vector<8x32xf32>
    %164 = arith.mulf %157, %163 : vector<8x32xf32>
    %165 = vector.extract_strided_slice %9 {offsets = [8, 0, 0], sizes = [1, 8, 128], strides = [1, 1, 1]} : vector<10x8x128xf32> to vector<1x8x128xf32>
    %166 = vector.shape_cast %165 : vector<1x8x128xf32> to vector<8x128xf32>
    %cst_27 = arith.constant dense<0.000000e+00> : vector<8x128xf32>
    %167 = tpu.matmul %164, %10, %cst_27 {dimension_numbers = #tpu.dot_dimension_numbers<[1], [0], [0], [1], [0, 0, 1, 1], [], []>} : vector<8x32xf32>, vector<32x128xf32>, vector<8x128xf32> -> vector<8x128xf32>
    %168 = arith.addf %166, %167 : vector<8x128xf32>
    %169 = arith.negf %168 : vector<8x128xf32>
    %170 = math.exp %169 : vector<8x128xf32>
    %cst_28 = arith.constant 1.000000e+00 : f32
    %171 = vector.broadcast %cst_28 : f32 to vector<8x128xf32>
    %172 = arith.addf %171, %170 : vector<8x128xf32>
    %173 = arith.divf %171, %172 : vector<8x128xf32>
    %174 = vector.extract_strided_slice %173 {offsets = [0, 0], sizes = [8, 32], strides = [1, 1]} : vector<8x128xf32> to vector<8x32xf32>
    %175 = vector.extract_strided_slice %173 {offsets = [0, 32], sizes = [8, 32], strides = [1, 1]} : vector<8x128xf32> to vector<8x32xf32>
    %176 = vector.extract_strided_slice %173 {offsets = [0, 96], sizes = [8, 32], strides = [1, 1]} : vector<8x128xf32> to vector<8x32xf32>
    %177 = vector.extract_strided_slice %168 {offsets = [0, 64], sizes = [8, 32], strides = [1, 1]} : vector<8x128xf32> to vector<8x32xf32>
    %178 = math.tanh %177 : vector<8x32xf32>
    %179 = arith.mulf %175, %162 : vector<8x32xf32>
    %180 = arith.mulf %174, %178 : vector<8x32xf32>
    %181 = arith.addf %179, %180 : vector<8x32xf32>
    %182 = math.tanh %181 : vector<8x32xf32>
    %183 = arith.mulf %176, %182 : vector<8x32xf32>
    %184 = vector.extract_strided_slice %9 {offsets = [9, 0, 0], sizes = [1, 8, 128], strides = [1, 1, 1]} : vector<10x8x128xf32> to vector<1x8x128xf32>
    %185 = vector.shape_cast %184 : vector<1x8x128xf32> to vector<8x128xf32>
    %cst_29 = arith.constant dense<0.000000e+00> : vector<8x128xf32>
    %186 = tpu.matmul %183, %10, %cst_29 {dimension_numbers = #tpu.dot_dimension_numbers<[1], [0], [0], [1], [0, 0, 1, 1], [], []>} : vector<8x32xf32>, vector<32x128xf32>, vector<8x128xf32> -> vector<8x128xf32>
    %187 = arith.addf %185, %186 : vector<8x128xf32>
    %188 = arith.negf %187 : vector<8x128xf32>
    %189 = math.exp %188 : vector<8x128xf32>
    %cst_30 = arith.constant 1.000000e+00 : f32
    %190 = vector.broadcast %cst_30 : f32 to vector<8x128xf32>
    %191 = arith.addf %190, %189 : vector<8x128xf32>
    %192 = arith.divf %190, %191 : vector<8x128xf32>
    %193 = vector.extract_strided_slice %192 {offsets = [0, 0], sizes = [8, 32], strides = [1, 1]} : vector<8x128xf32> to vector<8x32xf32>
    %194 = vector.extract_strided_slice %192 {offsets = [0, 32], sizes = [8, 32], strides = [1, 1]} : vector<8x128xf32> to vector<8x32xf32>
    %195 = vector.extract_strided_slice %192 {offsets = [0, 96], sizes = [8, 32], strides = [1, 1]} : vector<8x128xf32> to vector<8x32xf32>
    %196 = vector.extract_strided_slice %187 {offsets = [0, 64], sizes = [8, 32], strides = [1, 1]} : vector<8x128xf32> to vector<8x32xf32>
    %197 = math.tanh %196 : vector<8x32xf32>
    %198 = arith.mulf %194, %181 : vector<8x32xf32>
    %199 = arith.mulf %193, %197 : vector<8x32xf32>
    %200 = arith.addf %198, %199 : vector<8x32xf32>
    %201 = math.tanh %200 : vector<8x32xf32>
    %202 = arith.mulf %195, %201 : vector<8x32xf32>
    %c0_31 = arith.constant 0 : index
    %c0_32 = arith.constant 0 : index
    %203 = vector.load %arg9[%c0_31, %c0_32] : memref<8x32xf32, #tpu.memory_space<vmem>>, vector<8x32xf32>
    tpu.vector_store %arg9[%c0_31, %c0_32], %202 {strides = array<i32>} : memref<8x32xf32, #tpu.memory_space<vmem>>, vector<8x32xf32>,
    %c0_33 = arith.constant 0 : index
    %c0_34 = arith.constant 0 : index
    %204 = vector.load %arg10[%c0_33, %c0_34] : memref<8x32xf32, #tpu.memory_space<vmem>>, vector<8x32xf32>
    tpu.vector_store %arg10[%c0_33, %c0_34], %200 {strides = array<i32>} : memref<8x32xf32, #tpu.memory_space<vmem>>, vector<8x32xf32>,
    %205 = tpu.concatenate %31, %50, %69, %88, %107, %126, %145, %164, %183, %202 in 0 : vector<8x32xf32>, vector<8x32xf32>, vector<8x32xf32>, vector<8x32xf32>, vector<8x32xf32>, vector<8x32xf32>, vector<8x32xf32>, vector<8x32xf32>, vector<8x32xf32>, vector<8x32xf32> -> vector<80x32xf32>
    %c0_35 = arith.constant 0 : index
    %c0_36 = arith.constant 0 : index
    %206 = vector.load %arg4[%c0_35, %c0_36] : memref<32x1xf32, #tpu.memory_space<vmem>>, vector<32x1xf32>
    %cst_37 = arith.constant dense<0.000000e+00> : vector<80x1xf32>
    %207 = tpu.matmul %205, %206, %cst_37 {dimension_numbers = #tpu.dot_dimension_numbers<[1], [0], [0], [1], [0, 0, 1, 1], [], []>} : vector<80x32xf32>, vector<32x1xf32>, vector<80x1xf32> -> vector<80x1xf32>
    %c0_38 = arith.constant 0 : index
    %c0_39 = arith.constant 0 : index
    %208 = vector.load %arg5[%c0_38, %c0_39] : memref<1x1xf32, #tpu.memory_space<vmem>>, vector<1x1xf32>
    %209 = vector.broadcast %208 : vector<1x1xf32> to vector<80x1xf32>
    %210 = arith.addf %207, %209 : vector<80x1xf32>
    %c0_40 = arith.constant 0 : index
    %c0_41 = arith.constant 0 : index
    %211 = vector.load %arg8[%c0_40, %c0_41] : memref<80x1xf32, #tpu.memory_space<vmem>>, vector<80x1xf32>
    tpu.vector_store %arg8[%c0_40, %c0_41], %210 {strides = array<i32>} : memref<80x1xf32, #tpu.memory_space<vmem>>, vector<80x1xf32>,
    return
  }
}

</mosaic_0001>

<bundles_post_ra>
// kernel: tpu_custom_call.1
= control target key start
LH: loop header
LB: loop body
LE: loop exit
PB: predicated region body
PF: predicated region fallthrough
CT: control target
= control target key end

     0   :  { %s2145_s0 = inlined_call_operand.vmem [shape: f32[10,8,1], index: 0, kind: input, shape index: {}]   ;;  %s2146_s1 = inlined_call_operand.vmem [shape: f32[1,128], index: 1, kind: input, shape index: {}]   ;;  %s2147_s2 = inlined_call_operand.vmem [shape: f32[32,128], index: 2, kind: input, shape index: {}]   ;;  %s2148_s3 = inlined_call_operand.vmem [shape: f32[1,128], index: 3, kind: input, shape index: {}]   ;;  %s2149_s4 = inlined_call_operand.vmem [shape: f32[32,1], index: 4, kind: input, shape index: {}]   ;;  %s2150_s5 = inlined_call_operand.<no memory space> [shape: f32[1,1], index: 5, kind: input, shape index: {}]   ;;  %s2151_s6 = inlined_call_operand.vmem [shape: f32[8,32], index: 6, kind: input, shape index: {}]   ;;  %s2152_s7 = inlined_call_operand.vmem [shape: f32[8,32], index: 7, kind: input, shape index: {}]   ;;  %s2153_s8 = inlined_call_operand.vmem [shape: f32[80,1], index: 8, kind: output, shape index: {0}]   ;;  %s2154_s9 = inlined_call_operand.hbm [shape: f32[8,32], index: 9, kind: output, shape index: {1}]   ;;  %s2155_s10 = inlined_call_operand.hbm [shape: f32[8,32], index: 10, kind: output, shape index: {2}]  }
   0x1   :  { %v16_v0 = vstv %s2150_s5 }
   0x2   :  { %17 = vst [vmem:[#allocation2] sm:$0x1] %v16_v0 }
   0x3   :  { %18 = vsyncpa [#allocation4], 0  ;;  %v130_v1 = vld [vmem:[%s2147_s2] sm:$0xff]  ;;  %v131_v2 = vld [vmem:[%s2147_s2 + $0x8] sm:$0xff]  ;;  %v1757_v4 = vmov 0.0|0.0   ;;  %vm1758_vm0 = vmmov 0  }
   0x4   :  { %v132_v3 = vld [vmem:[%s2147_s2 + $0x10] sm:$0xff]  ;;  %1550 = vmatprep.subr.bf16.mxu1 %v1757_v4  ;;  %v1834_v5 = vpack.c.bf16 %v131_v2, %v130_v1  ;;  %v133_v6 = vld [vmem:[%s2147_s2 + $0x18] sm:$0xff]  ;;  %v1759_v7 = vmov 0.0   ;;  %v36_v8 = vld [vmem:[%s2145_s0] sm:$0xff]  ;;  %v1760_v9 = vmov 0   ;;  %1562 = vmatprep.subr.bf16.mxu0 %v1757_v4 }
   0x5   :  { %1425 = vmatprep.mubr.msk.f32.mxu1 %vm1758_vm0, %v1759_v7  ;;  %1627 = vset.pattern.permute.xlu0 %v1760_v9  ;;  %v135_v10 = vld [vmem:[%s2152_s7] sm:$0xff] }
   0x6   :  { %19 = vsyncpa [#allocation6], 0  ;;  %1552 = vmatpush3.bf16.msra.mxu1 %v1834_v5  ;;  %v1849_v11 = vpack.c.bf16 %v133_v6, %v132_v3  ;;  %49 = vperm.xlu0 %1627, %v36_v8   ;;  %s1761_s2 = smov 32   ;;  %v134_v12 = vld [vmem:[%s2151_s6] sm:$0xff]  ;;  %vm136_vm1 = vcmask 261120   ;;  %s1762_s30 = smov 64  }
   0x7   :  { %1553 = vmatprep.subr.bf16.mxu1 %v1757_v4  ;;  %219 = vrot.lane.b32.xlu1 %v135_v10, %s1761_s2  ;;  %v1874_v13 = vld [vmem:[%s2146_s1] ss:$0 sm:$0xff]  ;;  %v37_v33 = vld [vmem:[%s2145_s0 + $0x8] sm:$0xff]  ;;  %v38_v54 = vld [vmem:[%s2145_s0 + $0x10] sm:$0xff]  ;;  %vm1277_vm2 = vcmask 7168   ;;  %s1764_s25 = smov [#allocation3]  }
   0x8   :  { %1564 = vmatpush3.bf16.msra.mxu0 %v1834_v5  ;;  %1447 = vmatprep.mubr.msk.f32.mxu0 %vm1758_vm0, %v1759_v7  ;;  %v1880_v16 = vld [vmem:[%s2148_s3] ss:$0 sm:$0xff]  ;;  %s1296_s7 = sshll.u32 %s1764_s25, 4  ;;  %s1765_s26 = smov [#allocation5]   ;;  %s1297_s7 = int_to_ptr.vmem [resolvable:$true] %s1296_s7 }
   0x9   :  { %1565 = vmatprep.subr.bf16.mxu0 %v1757_v4  ;;  %1628 = vset.pattern.permute.xlu1 %v1760_v9  ;;  %s1306_s6 = sshll.u32 %s1765_s26, 4  ;;  %p1714_p1 = scmp.lt.s32.totalorder %s1297_s7, %s1297_s7  ;;  %s1307_s6 = int_to_ptr.vmem [resolvable:$true] %s1306_s6 }
   0xa   :  { %1555 = vmatpush3.bf16.msra.mxu1 %v1849_v11 }
   0xb   :  { %1556 = vmatprep.subr.bf16.mxu1 %v1757_v4 }
   0xc   :  { %1567 = vmatpush3.bf16.msra.mxu0 %v1849_v11 }
   0xd   :  { %1426 = vmatmul.mubr.msk.f32.vlgmr.msra.gmra.mrb[0].mxu1 %vm136_vm1, %v134_v12  ;;  %1574 = vmatprep.subr.bf16.mxu0 %v1757_v4 }
   0xe   :  { %1558 = vmatpush3.bf16.msra.mxu1 %v1834_v5  ;;  %1436 = vmatprep.mubr.msk.f32.mxu1 %vm1758_vm0, %v1759_v7 }
   0xf   :  { %1559 = vmatprep.subr.bf16.mxu1 %v1757_v4 }
  0x12   :  { %1561 = vmatpush3.bf16.msra.mxu1 %v1849_v11 }
  0x13   :  { %1568 = vmatprep.subr.bf16.mxu1 %v1757_v4 }
  0x79   :  { %v220_v28 = vpop.permute.xlu1 %219 }
  0x85   :  { %v50_v14 = vpop.permute.xlu0 %49 }
  0x86   :  { %v103_v15 = vmul.f32 %v1874_v13, %v50_v14 }
  0x88   :  { %v120_v17 = vadd.f32 %v1880_v16, %v103_v15 }
  0xe0   :  { %v206_v18 = vpop.f32.mrb[0].mxu1 }
  0xe1   :  { %v210_v19 = vadd.f32 %v206_v18, %v120_v17  ;;  %v1427_v20 = vpop.f32.mrb[1].mxu1  ;;  %v39_v17 = vld [vmem:[%s2145_s0 + $0x18] sm:$0xff] }
  0xe3   :  { %1629 = vtanh.f32 %v210_v19  ;;  %v1323_v22 = vmul.f32 -1.442695, %v210_v19 }
  0xe5   :  { %1631 = vpow2.f32 %v1323_v22 }
  0xed   :  { %v1630_v21 = vpop.eup %1629 }
  0xee   :  { %224 = vrot.lane.b32.xlu0 %v1630_v21, %s1762_s30 }
  0xef   :  { %v1632_v23 = vpop.eup %1631 }
  0xf0   :  { %v214_v24 = vadd.f32 1.0, %v1632_v23 }
  0xf2   :  { %1633 = vrcp.f32 %v214_v24 }
  0xfc   :  { %v1634_v25 = vpop.eup %1633 }
  0xfd   :  { %v222_v29 = vmul.f32 %v1634_v25, %v220_v28 }
 0x160   :  { %v225_v26 = vpop.permute.xlu0 %224 }
 0x161   :  { %v227_v27 = vmul.f32 %v1634_v25, %v225_v26 }
 0x163   :  { %229 = vrot.lane.b32.xlu1 %v227_v27, %s1761_s2 }
 0x1d5   :  { %v230_v30 = vpop.permute.xlu1 %229 }
 0x1d6   :  { %v232_v31 = vadd.f32 %v230_v30, %v222_v29 }
 0x1d8   :  { %1635 = vtanh.f32 %v232_v31 }
 0x1e2   :  { %v1636_v32 = vpop.eup %1635 }
 0x1e3   :  { %235 = vrot.lane.b32.xlu0 %v1636_v32, %s1762_s30 }
 0x1e7   :  { %54 = vperm.xlu0 %1627, %v37_v33  }
 0x255   :  { %v236_v34 = vpop.permute.xlu0 %235 }
 0x256   :  { %v238_v35 = vmul.f32 %v1634_v25, %v236_v34 }
 0x258   :  { %240 = vrot.lane.b32.xlu1 %v238_v35, %s1761_s2 }
 0x266   :  { %v55_v37 = vpop.permute.xlu0 %54 }
 0x267   :  { %v104_v38 = vmul.f32 %v1874_v13, %v55_v37 }
 0x269   :  { %v121_v39 = vadd.f32 %v1880_v16, %v104_v38 }
 0x2ca   :  { %v1890_v36 = vpop.permute.xlu1 %240 }
 0x2cb   :  { %1437 = vmatmul.mubr.msk.f32.vlgmr.msra.gmra.mrb[2].mxu1 %vm136_vm1, %v1890_v36 }
 0x2cc   :  { %1570 = vmatpush3.bf16.msra.mxu1 %v1834_v5  ;;  %1458 = vmatprep.mubr.msk.f32.mxu1 %vm1758_vm0, %v1759_v7 }
 0x2cd   :  { %1571 = vmatprep.subr.bf16.mxu1 %v1757_v4 }
 0x2d0   :  { %1573 = vmatpush3.bf16.msra.mxu1 %v1849_v11 }
 0x2d1   :  { %1580 = vmatprep.subr.bf16.mxu1 %v1757_v4 }
 0x39e   :  { %v310_v40 = vpop.f32.mrb[2].mxu1 }
 0x39f   :  { %v314_v41 = vadd.f32 %v310_v40, %v121_v39  ;;  %v1438_v42 = vpop.f32.mrb[3].mxu1  ;;  %v40_v39 = vld [vmem:[%s2145_s0 + $0x20] sm:$0xff] }
 0x3a1   :  { %1637 = vtanh.f32 %v314_v41  ;;  %v1325_v44 = vmul.f32 -1.442695, %v314_v41 }
 0x3a3   :  { %1639 = vpow2.f32 %v1325_v44 }
 0x3ab   :  { %v1638_v43 = vpop.eup %1637 }
 0x3ac   :  { %324 = vrot.lane.b32.xlu1 %v1638_v43, %s1762_s30 }
 0x3ad   :  { %v1640_v45 = vpop.eup %1639 }
 0x3ae   :  { %v318_v46 = vadd.f32 1.0, %v1640_v45 }
 0x3b0   :  { %1641 = vrcp.f32 %v318_v46 }
 0x3ba   :  { %v1642_v47 = vpop.eup %1641 }
 0x3bb   :  { %v322_v50 = vmul.f32 %v1642_v47, %v232_v31 }
 0x41e   :  { %v325_v48 = vpop.permute.xlu1 %324 }
 0x41f   :  { %v327_v49 = vmul.f32 %v1642_v47, %v325_v48 }
 0x421   :  { %329 = vrot.lane.b32.xlu0 %v327_v49, %s1761_s2 }
 0x493   :  { %v330_v51 = vpop.permute.xlu0 %329 }
 0x494   :  { %v332_v52 = vadd.f32 %v330_v51, %v322_v50 }
 0x496   :  { %1643 = vtanh.f32 %v332_v52 }
 0x4a0   :  { %v1644_v53 = vpop.eup %1643 }
 0x4a1   :  { %335 = vrot.lane.b32.xlu1 %v1644_v53, %s1762_s30 }
 0x4a5   :  { %59 = vperm.xlu1 %1628, %v38_v54  }
 0x513   :  { %v336_v55 = vpop.permute.xlu1 %335 }
 0x514   :  { %v338_v56 = vmul.f32 %v1642_v47, %v336_v55 }
 0x516   :  { %340 = vrot.lane.b32.xlu0 %v338_v56, %s1761_s2 }
 0x524   :  { %v60_v58 = vpop.permute.xlu1 %59 }
 0x525   :  { %v105_v59 = vmul.f32 %v1874_v13, %v60_v58 }
 0x527   :  { %v122_v60 = vadd.f32 %v1880_v16, %v105_v59 }
 0x588   :  { %v1909_v57 = vpop.permute.xlu0 %340 }
 0x589   :  { %1448 = vmatmul.mubr.msk.f32.vlgmr.msra.gmra.mrb[0].mxu0 %vm136_vm1, %v1909_v57 }
 0x58a   :  { %1576 = vmatpush3.bf16.msra.mxu0 %v1834_v5  ;;  %1469 = vmatprep.mubr.msk.f32.mxu0 %vm1758_vm0, %v1759_v7 }
 0x58b   :  { %1577 = vmatprep.subr.bf16.mxu0 %v1757_v4 }
 0x58e   :  { %1579 = vmatpush3.bf16.msra.mxu0 %v1849_v11 }
 0x58f   :  { %1586 = vmatprep.subr.bf16.mxu0 %v1757_v4 }
 0x65c   :  { %v410_v61 = vpop.f32.mrb[0].mxu0 }
 0x65d   :  { %v414_v62 = vadd.f32 %v410_v61, %v122_v60  ;;  %v1449_v63 = vpop.f32.mrb[1].mxu0  ;;  %v41_v61 = vld [vmem:[%s2145_s0 + $0x28] sm:$0xff] }
 0x65f   :  { %1645 = vtanh.f32 %v414_v62  ;;  %v1327_v1 = vmul.f32 -1.442695, %v414_v62 }
 0x661   :  { %1647 = vpow2.f32 %v1327_v1 }
 0x669   :  { %v1646_v0 = vpop.eup %1645 }
 0x66a   :  { %424 = vrot.lane.b32.xlu0 %v1646_v0, %s1762_s30 }
 0x66b   :  { %v1648_v2 = vpop.eup %1647 }
 0x66c   :  { %v418_v3 = vadd.f32 1.0, %v1648_v2 }
 0x66e   :  { %1649 = vrcp.f32 %v418_v3 }
 0x678   :  { %v1650_v6 = vpop.eup %1649 }
 0x679   :  { %v422_v10 = vmul.f32 %v1650_v6, %v332_v52 }
 0x6dc   :  { %v425_v8 = vpop.permute.xlu0 %424 }
 0x6dd   :  { %v427_v9 = vmul.f32 %v1650_v6, %v425_v8 }
 0x6df   :  { %429 = vrot.lane.b32.xlu1 %v427_v9, %s1761_s2 }
 0x751   :  { %v430_v12 = vpop.permute.xlu1 %429 }
 0x752   :  { %v432_v14 = vadd.f32 %v430_v12, %v422_v10 }
 0x754   :  { %1651 = vtanh.f32 %v432_v14 }
 0x75e   :  { %v1652_v15 = vpop.eup %1651 }
 0x75f   :  { %435 = vrot.lane.b32.xlu0 %v1652_v15, %s1762_s30 }
 0x763   :  { %64 = vperm.xlu0 %1627, %v39_v17  }
 0x7d1   :  { %v436_v18 = vpop.permute.xlu0 %435 }
 0x7d2   :  { %v438_v19 = vmul.f32 %v1650_v6, %v436_v18 }
 0x7d4   :  { %440 = vrot.lane.b32.xlu1 %v438_v19, %s1761_s2 }
 0x7e2   :  { %v65_v21 = vpop.permute.xlu0 %64 }
 0x7e3   :  { %v106_v22 = vmul.f32 %v1874_v13, %v65_v21 }
 0x7e5   :  { %v123_v23 = vadd.f32 %v1880_v16, %v106_v22 }
 0x846   :  { %v1928_v20 = vpop.permute.xlu1 %440 }
 0x847   :  { %1459 = vmatmul.mubr.msk.f32.vlgmr.msra.gmra.mrb[4].mxu1 %vm136_vm1, %v1928_v20 }
 0x848   :  { %1582 = vmatpush3.bf16.msra.mxu1 %v1834_v5  ;;  %1480 = vmatprep.mubr.msk.f32.mxu1 %vm1758_vm0, %v1759_v7 }
 0x849   :  { %1583 = vmatprep.subr.bf16.mxu1 %v1757_v4 }
 0x84c   :  { %1585 = vmatpush3.bf16.msra.mxu1 %v1849_v11 }
 0x84d   :  { %1592 = vmatprep.subr.bf16.mxu1 %v1757_v4 }
 0x91a   :  { %v510_v24 = vpop.f32.mrb[4].mxu1 }
 0x91b   :  { %v514_v25 = vadd.f32 %v510_v24, %v123_v23  ;;  %v1460_v26 = vpop.f32.mrb[5].mxu1 }
 0x91d   :  { %1653 = vtanh.f32 %v514_v25  ;;  %v1329_v28 = vmul.f32 -1.442695, %v514_v25  ;;  %v42_v25 = vld [vmem:[%s2145_s0 + $0x30] sm:$0xff] }
 0x91f   :  { %1655 = vpow2.f32 %v1329_v28 }
 0x927   :  { %v1654_v27 = vpop.eup %1653 }
 0x928   :  { %524 = vrot.lane.b32.xlu1 %v1654_v27, %s1762_s30 }
 0x929   :  { %v1656_v29 = vpop.eup %1655 }
 0x92a   :  { %v518_v30 = vadd.f32 1.0, %v1656_v29 }
 0x92c   :  { %1657 = vrcp.f32 %v518_v30 }
 0x936   :  { %v1658_v31 = vpop.eup %1657 }
 0x937   :  { %v522_v34 = vmul.f32 %v1658_v31, %v432_v14 }
 0x99a   :  { %v525_v32 = vpop.permute.xlu1 %524 }
 0x99b   :  { %v527_v33 = vmul.f32 %v1658_v31, %v525_v32 }
 0x99d   :  { %529 = vrot.lane.b32.xlu0 %v527_v33, %s1761_s2 }
 0xa0f   :  { %v530_v35 = vpop.permute.xlu0 %529 }
 0xa10   :  { %v532_v37 = vadd.f32 %v530_v35, %v522_v34 }
 0xa12   :  { %1659 = vtanh.f32 %v532_v37 }
 0xa1c   :  { %v1660_v38 = vpop.eup %1659 }
 0xa1d   :  { %535 = vrot.lane.b32.xlu1 %v1660_v38, %s1762_s30 }
 0xa21   :  { %69 = vperm.xlu1 %1628, %v40_v39  }
 0xa8f   :  { %v536_v40 = vpop.permute.xlu1 %535 }
 0xa90   :  { %v538_v41 = vmul.f32 %v1658_v31, %v536_v40 }
 0xa92   :  { %540 = vrot.lane.b32.xlu0 %v538_v41, %s1761_s2 }
 0xaa0   :  { %v70_v43 = vpop.permute.xlu1 %69 }
 0xaa1   :  { %v107_v44 = vmul.f32 %v1874_v13, %v70_v43 }
 0xaa3   :  { %v124_v45 = vadd.f32 %v1880_v16, %v107_v44 }
 0xb04   :  { %v1947_v42 = vpop.permute.xlu0 %540 }
 0xb05   :  { %1470 = vmatmul.mubr.msk.f32.vlgmr.msra.gmra.mrb[2].mxu0 %vm136_vm1, %v1947_v42 }
 0xb06   :  { %1588 = vmatpush3.bf16.msra.mxu0 %v1834_v5  ;;  %1491 = vmatprep.mubr.msk.f32.mxu0 %vm1758_vm0, %v1759_v7 }
 0xb07   :  { %1589 = vmatprep.subr.bf16.mxu0 %v1757_v4 }
 0xb0a   :  { %1591 = vmatpush3.bf16.msra.mxu0 %v1849_v11 }
 0xb0b   :  { %1598 = vmatprep.subr.bf16.mxu0 %v1757_v4 }
 0xbd8   :  { %v610_v46 = vpop.f32.mrb[2].mxu0 }
 0xbd9   :  { %v614_v47 = vadd.f32 %v610_v46, %v124_v45  ;;  %v1471_v48 = vpop.f32.mrb[3].mxu0 }
 0xbda   :  { %v43_v48 = vld [vmem:[%s2145_s0 + $0x38] sm:$0xff] }
 0xbdb   :  { %1661 = vtanh.f32 %v614_v47  ;;  %v1331_v50 = vmul.f32 -1.442695, %v614_v47 }
 0xbdd   :  { %1663 = vpow2.f32 %v1331_v50 }
 0xbe5   :  { %v1662_v49 = vpop.eup %1661 }
 0xbe6   :  { %624 = vrot.lane.b32.xlu0 %v1662_v49, %s1762_s30 }
 0xbe7   :  { %v1664_v51 = vpop.eup %1663 }
 0xbe8   :  { %v618_v52 = vadd.f32 1.0, %v1664_v51 }
 0xbea   :  { %1665 = vrcp.f32 %v618_v52 }
 0xbf4   :  { %v1666_v53 = vpop.eup %1665 }
 0xbf5   :  { %v622_v56 = vmul.f32 %v1666_v53, %v532_v37 }
 0xc58   :  { %v625_v54 = vpop.permute.xlu0 %624 }
 0xc59   :  { %v627_v55 = vmul.f32 %v1666_v53, %v625_v54 }
 0xc5b   :  { %629 = vrot.lane.b32.xlu1 %v627_v55, %s1761_s2 }
 0xccd   :  { %v630_v58 = vpop.permute.xlu1 %629 }
 0xcce   :  { %v632_v59 = vadd.f32 %v630_v58, %v622_v56 }
 0xcd0   :  { %1667 = vtanh.f32 %v632_v59 }
 0xcda   :  { %v1668_v60 = vpop.eup %1667 }
 0xcdb   :  { %635 = vrot.lane.b32.xlu0 %v1668_v60, %s1762_s30 }
 0xcdf   :  { %74 = vperm.xlu0 %1627, %v41_v61  }
 0xd4d   :  { %v636_v62 = vpop.permute.xlu0 %635 }
 0xd4e   :  { %v638_v63 = vmul.f32 %v1666_v53, %v636_v62 }
 0xd50   :  { %640 = vrot.lane.b32.xlu1 %v638_v63, %s1761_s2 }
 0xd5e   :  { %v75_v1 = vpop.permute.xlu0 %74 }
 0xd5f   :  { %v108_v2 = vmul.f32 %v1874_v13, %v75_v1 }
 0xd61   :  { %v125_v3 = vadd.f32 %v1880_v16, %v108_v2 }
 0xdc2   :  { %v1966_v0 = vpop.permute.xlu1 %640 }
 0xdc3   :  { %1481 = vmatmul.mubr.msk.f32.vlgmr.msra.gmra.mrb[6].mxu1 %vm136_vm1, %v1966_v0 }
 0xdc4   :  { %1594 = vmatpush3.bf16.msra.mxu1 %v1834_v5  ;;  %1502 = vmatprep.mubr.msk.f32.mxu1 %vm1758_vm0, %v1759_v7 }
 0xdc5   :  { %1595 = vmatprep.subr.bf16.mxu1 %v1757_v4 }
 0xdc8   :  { %1597 = vmatpush3.bf16.msra.mxu1 %v1849_v11 }
 0xdc9   :  { %1604 = vmatprep.subr.bf16.mxu1 %v1757_v4 }
 0xe96   :  { %v710_v6 = vpop.f32.mrb[6].mxu1 }
 0xe97   :  { %v714_v8 = vadd.f32 %v710_v6, %v125_v3  ;;  %v1482_v9 = vpop.f32.mrb[7].mxu1  ;;  %v44_v3 = vld [vmem:[%s2145_s0 + $0x40] sm:$0xff] }
 0xe98   :  { %v1149_v6 = vld [vmem:[%s2149_s4] sm:$0xff] }
 0xe99   :  { %1669 = vtanh.f32 %v714_v8  ;;  %v1333_v12 = vmul.f32 -1.442695, %v714_v8  ;;  %v1150_v8 = vld [vmem:[%s2149_s4 + $0x8] sm:$0xff] }
 0xe9a   :  { %v1610_v9 = vpack.c.bf16 %v1150_v8, %v1149_v6 }
 0xe9b   :  { %1671 = vpow2.f32 %v1333_v12 }
 0xea3   :  { %v1670_v10 = vpop.eup %1669 }
 0xea4   :  { %724 = vrot.lane.b32.xlu1 %v1670_v10, %s1762_s30 }
 0xea5   :  { %v1672_v14 = vpop.eup %1671 }
 0xea6   :  { %v718_v15 = vadd.f32 1.0, %v1672_v14  ;;  %v1151_v14 = vld [vmem:[%s2149_s4 + $0x10] sm:$0xff] }
 0xea8   :  { %1673 = vrcp.f32 %v718_v15  ;;  %v1152_v15 = vld [vmem:[%s2149_s4 + $0x18] sm:$0xff] }
 0xeb2   :  { %v1674_v17 = vpop.eup %1673 }
 0xeb3   :  { %v722_v21 = vmul.f32 %v1674_v17, %v632_v59 }
 0xf16   :  { %v725_v18 = vpop.permute.xlu1 %724 }
 0xf17   :  { %v727_v19 = vmul.f32 %v1674_v17, %v725_v18 }
 0xf19   :  { %729 = vrot.lane.b32.xlu0 %v727_v19, %s1761_s2 }
 0xf8b   :  { %v730_v22 = vpop.permute.xlu0 %729 }
 0xf8c   :  { %v732_v23 = vadd.f32 %v730_v22, %v722_v21 }
 0xf8e   :  { %1675 = vtanh.f32 %v732_v23 }
 0xf98   :  { %v1676_v24 = vpop.eup %1675 }
 0xf99   :  { %735 = vrot.lane.b32.xlu1 %v1676_v24, %s1762_s30 }
 0xf9d   :  { %79 = vperm.xlu1 %1628, %v42_v25  }
0x100b   :  { %v736_v26 = vpop.permute.xlu1 %735 }
0x100c   :  { %v738_v27 = vmul.f32 %v1674_v17, %v736_v26  ;;  %v1614_v17 = vpack.c.bf16 %v1152_v15, %v1151_v14 }
0x100e   :  { %740 = vrot.lane.b32.xlu0 %v738_v27, %s1761_s2 }
0x101c   :  { %v80_v29 = vpop.permute.xlu1 %79 }
0x101d   :  { %v109_v30 = vmul.f32 %v1874_v13, %v80_v29 }
0x101f   :  { %v126_v31 = vadd.f32 %v1880_v16, %v109_v30 }
0x1080   :  { %v1985_v28 = vpop.permute.xlu0 %740 }
0x1081   :  { %1492 = vmatmul.mubr.msk.f32.vlgmr.msra.gmra.mrb[4].mxu0 %vm136_vm1, %v1985_v28 }
0x1082   :  { %1600 = vmatpush3.bf16.msra.mxu0 %v1834_v5  ;;  %1513 = vmatprep.mubr.msk.f32.mxu0 %vm1758_vm0, %v1759_v7 }
0x1083   :  { %1601 = vmatprep.subr.bf16.mxu0 %v1757_v4 }
0x1086   :  { %1603 = vmatpush3.bf16.msra.mxu0 %v1849_v11 }
0x1087   :  { %1611 = vmatprep.subr.bf16.mxu0 %v1610_v9 }
0x1154   :  { %v810_v32 = vpop.f32.mrb[4].mxu0 }
0x1155   :  { %v814_v33 = vadd.f32 %v810_v32, %v126_v31  ;;  %v1493_v34 = vpop.f32.mrb[5].mxu0 }
0x1157   :  { %1677 = vtanh.f32 %v814_v33  ;;  %v1335_v37 = vmul.f32 -1.442695, %v814_v33 }
0x1159   :  { %1679 = vpow2.f32 %v1335_v37 }
0x1161   :  { %v1678_v35 = vpop.eup %1677 }
0x1162   :  { %824 = vrot.lane.b32.xlu0 %v1678_v35, %s1762_s30 }
0x1163   :  { %v1680_v38 = vpop.eup %1679 }
0x1164   :  { %v818_v39 = vadd.f32 1.0, %v1680_v38 }
0x1166   :  { %1681 = vrcp.f32 %v818_v39 }
0x1170   :  { %v1682_v40 = vpop.eup %1681 }
0x1171   :  { %v822_v44 = vmul.f32 %v1682_v40, %v732_v23 }
0x11d4   :  { %v825_v41 = vpop.permute.xlu0 %824 }
0x11d5   :  { %v827_v43 = vmul.f32 %v1682_v40, %v825_v41 }
0x11d7   :  { %829 = vrot.lane.b32.xlu1 %v827_v43, %s1761_s2 }
0x1249   :  { %v830_v45 = vpop.permute.xlu1 %829 }
0x124a   :  { %v832_v46 = vadd.f32 %v830_v45, %v822_v44 }
0x124c   :  { %1683 = vtanh.f32 %v832_v46 }
0x1256   :  { %v1684_v47 = vpop.eup %1683 }
0x1257   :  { %835 = vrot.lane.b32.xlu0 %v1684_v47, %s1762_s30 }
0x125b   :  { %84 = vperm.xlu0 %1627, %v43_v48  }
0x12c9   :  { %v836_v49 = vpop.permute.xlu0 %835 }
0x12ca   :  { %v838_v50 = vmul.f32 %v1682_v40, %v836_v49 }
0x12cc   :  { %840 = vrot.lane.b32.xlu1 %v838_v50, %s1761_s2 }
0x12da   :  { %v85_v52 = vpop.permute.xlu0 %84 }
0x12db   :  { %v110_v53 = vmul.f32 %v1874_v13, %v85_v52 }
0x12dd   :  { %v127_v54 = vadd.f32 %v1880_v16, %v110_v53 }
0x133e   :  { %v841_v51 = vpop.permute.xlu1 %840 }
0x133f   :  { %1503 = vmatmul.mubr.msk.f32.vlgmr.msra.gmra.mrb[8].mxu1 %vm136_vm1, %v841_v51 }
0x1340   :  { %1606 = vmatpush3.bf16.msra.mxu1 %v1834_v5  ;;  %1524 = vmatprep.mubr.msk.f32.mxu1 %vm1758_vm0, %v1759_v7 }
0x1341   :  { %1607 = vmatprep.subr.bf16.mxu1 %v1757_v4 }
0x1344   :  { %1609 = vmatpush3.bf16.msra.mxu1 %v1849_v11 }
0x1412   :  { %v910_v55 = vpop.f32.mrb[8].mxu1 }
0x1413   :  { %v914_v56 = vadd.f32 %v910_v55, %v127_v54  ;;  %v1504_v58 = vpop.f32.mrb[9].mxu1 }
0x1415   :  { %1685 = vtanh.f32 %v914_v56  ;;  %v1337_v5 = vmul.f32 -1.442695, %v914_v56 }
0x1417   :  { %1687 = vpow2.f32 %v1337_v5 }
0x141f   :  { %v1686_v59 = vpop.eup %1685 }
0x1420   :  { %924 = vrot.lane.b32.xlu1 %v1686_v59, %s1762_s30 }
0x1421   :  { %v1688_v60 = vpop.eup %1687 }
0x1422   :  { %v918_v7 = vadd.f32 1.0, %v1688_v60 }
0x1424   :  { %1689 = vrcp.f32 %v918_v7 }
0x142e   :  { %v1690_v4 = vpop.eup %1689 }
0x142f   :  { %v922_v62 = vmul.f32 %v1690_v4, %v832_v46 }
0x1492   :  { %v925_v61 = vpop.permute.xlu1 %924 }
0x1493   :  { %v927_v11 = vmul.f32 %v1690_v4, %v925_v61 }
0x1495   :  { %929 = vrot.lane.b32.xlu0 %v927_v11, %s1761_s2 }
0x1507   :  { %v930_v63 = vpop.permute.xlu0 %929 }
0x1508   :  { %v2013_v1 = vadd.f32 %v930_v63, %v922_v62 }
0x150a   :  { %1691 = vtanh.f32 %v2013_v1 }
0x1514   :  { %v1692_v2 = vpop.eup %1691 }
0x1515   :  { %935 = vrot.lane.b32.xlu1 %v1692_v2, %s1762_s30 }
0x1519   :  { %89 = vperm.xlu1 %1628, %v44_v3  }
0x1587   :  { %v936_v10 = vpop.permute.xlu1 %935 }
0x1588   :  { %v938_v12 = vmul.f32 %v1690_v4, %v936_v10 }
0x158a   :  { %940 = vrot.lane.b32.xlu0 %v938_v12, %s1761_s2 }
0x15fc   :  { %v941_v18 = vpop.permute.xlu0 %940 }
0x15fd   :  { %1514 = vmatmul.mubr.msk.f32.vlgmr.msra.gmra.mrb[6].mxu0 %vm136_vm1, %v941_v18 }
0x15fe   :  { %1613 = vmatpush3.bf16.msra.mxu0 %v1610_v9  ;;  %1535 = vmatprep.mubr.msk.f32.mxu0 %vm136_vm1, %v1890_v36  ;;  %v90_v36 = vpop.permute.xlu1 %89 }
0x15ff   :  { %1615 = vmatprep.subr.bf16.mxu0 %v1614_v17  ;;  %v111_v19 = vmul.f32 %v1874_v13, %v90_v36 }
0x1602   :  { %1617 = vmatpush3.bf16.msra.mxu0 %v1614_v17 }
0x1605   :  { %1536 = vmatmul.mubr.msk.f32.vlgmr.msra.gmra.mrb[8].mxu0 %vm136_vm1, %v1909_v57  ;;  %v128_v57 = vadd.f32 %v1880_v16, %v111_v19 }
0x1606   :  { %1538 = vmatprep.mubr.msk.f32.mxu0 %vm136_vm1, %v1928_v20 }
0x1609   :  { %1539 = vmatmul.mubr.msk.f32.gmra.mrb[10].mxu0 %vm136_vm1, %v1947_v42  ;;  %v2050_v42 = vld [vmem:[#allocation2] ss:$0 sm:$0xff] }
0x160a   :  { %1541 = vmatprep.mubr.msk.f32.mxu0 %vm136_vm1, %v1966_v0 }
0x160d   :  { %1542 = vmatmul.mubr.msk.f32.gmra.mrb[12].mxu0 %vm136_vm1, %v1985_v28 }
0x160e   :  { %1544 = vmatprep.mubr.msk.f32.mxu0 %vm136_vm1, %v841_v51  ;;  %v45_v51 = vld [vmem:[%s2145_s0 + $0x48] sm:$0xff]  ;;  %s1763_s0 = smov 96  }
0x1611   :  { %1545 = vmatmul.mubr.msk.f32.gmra.mrb[14].mxu0 %vm136_vm1, %v941_v18 }
0x16d0   :  { %v1010_v21 = vpop.f32.mrb[6].mxu0 }
0x16d1   :  { %v1014_v20 = vadd.f32 %v1010_v21, %v128_v57  ;;  %v1515_v22 = vpop.f32.mrb[7].mxu0 }
0x16d3   :  { %1693 = vtanh.f32 %v1014_v20  ;;  %v1339_v40 = vmul.f32 -1.442695, %v1014_v20 }
0x16d5   :  { %1695 = vpow2.f32 %v1339_v40 }
0x16d8   :  { %v1537_v23 = vpop.f32.mrb[8].mxu0 }
0x16d9   :  { %v1234_v0 = vadd.f32 %v1537_v23, %v2050_v42  ;;  %v1228_v24 = vpop.f32.mrb[9].mxu0 }
0x16da   :  { %v1229_v25 = vadd.f32 %v2050_v42, %v1228_v24 }
0x16db   :  { %1279 = vst.msk [vmem:[%s2153_s8 + $0x8] sm:$0xff] %vm1277_vm2, %v1234_v0 }
0x16dc   :  { %1278 = vst.msk [vmem:[%s2153_s8] sm:$0xff] %vm1277_vm2, %v1229_v25  ;;  %v1540_v26 = vpop.f32.mrb[10].mxu0 }
0x16dd   :  { %v1694_v27 = vpop.eup %1693  ;;  %v1244_v28 = vadd.f32 %v1540_v26, %v2050_v42  ;;  %v1238_v29 = vpop.f32.mrb[11].mxu0 }
0x16de   :  { %v1239_v30 = vadd.f32 %v2050_v42, %v1238_v29  ;;  %1024 = vrot.lane.b32.xlu0 %v1694_v27, %s1762_s30 }
0x16df   :  { %1281 = vst.msk [vmem:[%s2153_s8 + $0x18] sm:$0xff] %vm1277_vm2, %v1244_v28  ;;  %v1696_v41 = vpop.eup %1695 }
0x16e0   :  { %1280 = vst.msk [vmem:[%s2153_s8 + $0x10] sm:$0xff] %vm1277_vm2, %v1239_v30  ;;  %v1543_v31 = vpop.f32.mrb[12].mxu0  ;;  %v1018_v43 = vadd.f32 1.0, %v1696_v41 }
0x16e1   :  { %v1254_v32 = vadd.f32 %v1543_v31, %v2050_v42  ;;  %v1248_v33 = vpop.f32.mrb[13].mxu0 }
0x16e2   :  { %v1249_v34 = vadd.f32 %v2050_v42, %v1248_v33  ;;  %1697 = vrcp.f32 %v1018_v43 }
0x16e3   :  { %1283 = vst.msk [vmem:[%s2153_s8 + $0x28] sm:$0xff] %vm1277_vm2, %v1254_v32 }
0x16e4   :  { %1282 = vst.msk [vmem:[%s2153_s8 + $0x20] sm:$0xff] %vm1277_vm2, %v1249_v34  ;;  %v1546_v35 = vpop.f32.mrb[14].mxu0 }
0x16e5   :  { %v1264_v37 = vadd.f32 %v1546_v35, %v2050_v42  ;;  %v1258_v38 = vpop.f32.mrb[15].mxu0 }
0x16e6   :  { %v1259_v39 = vadd.f32 %v2050_v42, %v1258_v38 }
0x16e7   :  { %1285 = vst.msk [vmem:[%s2153_s8 + $0x38] sm:$0xff] %vm1277_vm2, %v1264_v37 }
0x16e8   :  { %1284 = vst.msk [vmem:[%s2153_s8 + $0x30] sm:$0xff] %vm1277_vm2, %v1259_v39 }
0x16ec   :  { %v1698_v44 = vpop.eup %1697 }
0x16ed   :  { %v1022_v47 = vmul.f32 %v1698_v44, %v2013_v1 }
0x1750   :  { %v1025_v45 = vpop.permute.xlu0 %1024 }
0x1751   :  { %v1027_v46 = vmul.f32 %v1698_v44, %v1025_v45 }
0x1753   :  { %1029 = vrot.lane.b32.xlu1 %v1027_v46, %s1761_s2 }
0x17c5   :  { %v1030_v48 = vpop.permute.xlu1 %1029 }
0x17c6   :  { %v1032_v49 = vadd.f32 %v1030_v48, %v1022_v47 }
0x17c8   :  { %1699 = vtanh.f32 %v1032_v49 }
0x17d2   :  { %v1700_v50 = vpop.eup %1699 }
0x17d3   :  { %1035 = vrot.lane.b32.xlu0 %v1700_v50, %s1762_s30 }
0x17d7   :  { %94 = vperm.xlu0 %1627, %v45_v51  }
0x1845   :  { %v1036_v52 = vpop.permute.xlu0 %1035 }
0x1846   :  { %v1038_v53 = vmul.f32 %v1698_v44, %v1036_v52 }
0x1848   :  { %1040 = vrot.lane.b32.xlu1 %v1038_v53, %s1761_s2 }
0x1856   :  { %v95_v55 = vpop.permute.xlu0 %94 }
0x1857   :  { %v112_v56 = vmul.f32 %v1874_v13, %v95_v55 }
0x1859   :  { %v129_v58 = vadd.f32 %v1880_v16, %v112_v56 }
0x18ba   :  { %v1041_v54 = vpop.permute.xlu1 %1040 }
0x18bb   :  { %1525 = vmatmul.mubr.msk.f32.vlgmr.msra.gmra.mrb[10].mxu1 %vm136_vm1, %v1041_v54  ;;  %1547 = vmatprep.mubr.msk.f32.mxu0 %vm136_vm1, %v1041_v54 }
0x198e   :  { %v1110_v59 = vpop.f32.mrb[10].mxu1 }
0x198f   :  { %v1114_v5 = vadd.f32 %v1110_v59, %v129_v58  ;;  %v1526_v60 = vpop.f32.mrb[11].mxu1 }
0x1991   :  { %1701 = vtanh.f32 %v1114_v5  ;;  %v1341_v4 = vmul.f32 -1.442695, %v1114_v5 }
0x1993   :  { %1703 = vpow2.f32 %v1341_v4 }
0x199b   :  { %v1702_v7 = vpop.eup %1701 }
0x199c   :  { %1124 = vrot.lane.b32.xlu1 %v1702_v7, %s1762_s30 }
0x199d   :  { %v1704_v61 = vpop.eup %1703 }
0x199e   :  { %v1118_v11 = vadd.f32 1.0, %v1704_v61 }
0x19a0   :  { %1705 = vrcp.f32 %v1118_v11 }
0x19aa   :  { %v1706_v62 = vpop.eup %1705 }
0x19ab   :  { %v1122_v13 = vmul.f32 %v1706_v62, %v1032_v49 }
0x1a0e   :  { %v1125_v63 = vpop.permute.xlu1 %1124 }
0x1a0f   :  { %v1127_v1 = vmul.f32 %v1706_v62, %v1125_v63 }
0x1a11   :  { %1129 = vrot.lane.b32.xlu0 %v1127_v1, %s1761_s2 }
0x1a83   :  { %v1130_v2 = vpop.permute.xlu0 %1129 }
0x1a84   :  { %v1132_v16 = vadd.f32 %v1130_v2, %v1122_v13 }
0x1a86   :  { %1707 = vtanh.f32 %v1132_v16 }
0x1a90   :  { %v1708_v3 = vpop.eup %1707 }
0x1a91   :  { %1135 = vrot.lane.b32.xlu1 %v1708_v3, %s1762_s30  ;;  %s1709_s30 = scalar_lea.vmem %s1297_s7, 128 }
0x1a92   :  { %p1710_p0 = scmp.ne.s32.totalorder %s1297_s7, %s1709_s30  ;;  %p1715_p2 = scmp.lt.s32.totalorder %s1709_s30, %s1709_s30 }
0x1a94   :  { %p1716_p3 = por %p1715_p2, %p1714_p1 }
0x1a95   :  { %1145 = vrot.lane.b32.xlu1 %v1132_v16, %s1763_s0 }
0x1a96   :  { %p1717_p4 = pnand %p1716_p3, %p1710_p0 }
0x1b03   :  { %v1136_v6 = vpop.permute.xlu1 %1135 }
0x1b04   :  { %v1138_v8 = vmul.f32 %v1706_v62, %v1136_v6 }
0x1b06   :  { %1140 = vrot.lane.b32.xlu0 %v1138_v8, %s1761_s2 }
0x1b07   :  { %v1146_v9 = vpop.permute.xlu1 %1145 }
0x1b08   :  { %1148 = vst.msk [vmem:[#allocation5] sm:$0xff] %vm136_vm1, %v1146_v9 }
0x1b78   :  { %v1141_v10 = vpop.permute.xlu0 %1140 }
0x1b79   :  { %1143 = vst.msk [vmem:[#allocation3] sm:$0xff] %vm136_vm1, %v1141_v10  ;;  %1548 = vmatmul.mubr.msk.f32.gmra.mrb[16].mxu0 %vm136_vm1, %v1141_v10 }
0x1b7a   :  { %1720 = shalt.err (!%p1717_p4)
}
0x1b7b   :  { %s1721_s28 = scalar_lea.hbm %s2154_s9, 128 }
0x1b7c   :  { %p1722_p5 = scmp.ne.s32.totalorder %s2154_s9, %s1721_s28  ;;  %p1725_p6 = scmp.lt.u32.totalorder %s1721_s28, %s2154_s9 }
0x1b7e   :  { %p1727_p7 = pnand %p1725_p6, %p1722_p5 }
0x1b80   :  { %1730 = shalt.err (!%p1727_p7)
}
0x1b81   :  { %1299 = dma.vmem_to_hbm [thread:$0]  %s1297_s7, 128, %s2154_s9, [#allocation4]  }
0x1b82   :  { %s1731_s13 = scalar_lea.vmem %s1307_s6, 128  ;;  %p1736_p9 = scmp.lt.s32.totalorder %s1307_s6, %s1307_s6 }
0x1b83   :  { %p1732_p8 = scmp.ne.s32.totalorder %s1307_s6, %s1731_s13  ;;  %p1737_p10 = scmp.lt.s32.totalorder %s1731_s13, %s1731_s13 }
0x1b85   :  { %p1738_p11 = por %p1737_p10, %p1736_p9 }
0x1b87   :  { %p1739_p12 = pnand %p1738_p11, %p1732_p8 }
0x1b89   :  { %1742 = shalt.err (!%p1739_p12)
}
0x1b8a   :  { %s1743_s16 = scalar_lea.hbm %s2155_s10, 128 }
0x1b8b   :  { %p1744_p13 = scmp.ne.s32.totalorder %s2155_s10, %s1743_s16  ;;  %p1747_p0 = scmp.lt.u32.totalorder %s1743_s16, %s2155_s10 }
0x1b8d   :  { %p1749_p1 = pnand %p1747_p0, %p1744_p13 }
0x1b8f   :  { %1752 = shalt.err (!%p1749_p1)
}
0x1b90   :  { %1309 = dma.vmem_to_hbm [thread:$0]  %s1307_s6, 128, %s2155_s10, [#allocation6]  }
0x1c4c   :  { %v1549_v12 = vpop.f32.mrb[16].mxu0 }
0x1c4d   :  { %v1274_v14 = vadd.f32 %v1549_v12, %v2050_v42  ;;  %v1268_v15 = vpop.f32.mrb[17].mxu0 }
0x1c4e   :  { %v1269_v17 = vadd.f32 %v2050_v42, %v1268_v15 }
0x1c4f   :  { %1287 = vst.msk [vmem:[%s2153_s8 + $0x48] sm:$0xff] %vm1277_vm2, %v1274_v14 }
0x1c50   :  { %1286 = vst.msk [vmem:[%s2153_s8 + $0x40] sm:$0xff] %vm1277_vm2, %v1269_v17 }
0x1c51   :  { %1753 = dma.done.wait [#allocation4], 128  }
0x1c52   :  { %1754 = vsyncadd [#allocation4], 4294967168 }
0x1c53   :  { %1755 = dma.done.wait [#allocation6], 128  }
0x1c54   :  { %1756 = vsyncadd [#allocation6], 4294967168 }
0x1c55   :  { %1318 = vsyncpa [#allocation4], 1 }
0x1c56   :  { %1319 = vsyncpa [#allocation6], 1 }

</bundles_post_ra>
